<compile_context>
chip_gen: v6e
topology: v6e:2x2x1
jax: 0.10.0
libtpu: 0.0.40
codegen_flags: <defaults>
</compile_context>

<pallas_src>
import functools
import math

import jax
import jax.numpy as jnp
from jax.experimental import pallas as pl
from jax.experimental.pallas import tpu as pltpu


_VMEM_CAP_CACHE = [None]


def _vmem_capacity_bytes():
    """One-time hardware query (no per-call probing / recompiles)."""
    if _VMEM_CAP_CACHE[0] is None:
        try:
            _VMEM_CAP_CACHE[0] = int(pltpu.get_tpu_info().vmem_capacity_bytes)
        except Exception:
            _VMEM_CAP_CACHE[0] = 64 * 1024 * 1024   # conservative (v7x-sized)
    return _VMEM_CAP_CACHE[0]


def _round_up(x, m):
    return ((x + m - 1) // m) * m


def _pick_batch_tile(B, dout2_p, vmem_cap):
    """Largest MXU-friendly batch tile dividing B.  VMEM-aware (the live f32
    epilogue tile is ~4*bt*dout2_p bytes) and prefers an EVEN number of grid
    steps so the 'parallel' batch axis shards evenly across 2 TensorCores."""
    max_bt = 512
    if dout2_p >= 4096 and vmem_cap <= 96 * 1024 * 1024:
        max_bt = 256                      # v7x (64 MiB VMEM): keep headroom
    best_any = None
    for bt in (512, 384, 256, 128, 64, 32, 16, 8):
        if bt > max_bt or B % bt != 0:
            continue
        steps = B // bt
        if steps >= 2 and steps % 2 == 0:
            return bt                     # biggest tile with an even step count
        if best_any is None and steps >= 2:
            best_any = bt
    return best_any if best_any is not None else B


def _gaussian_rama_kernel(x_ref, wp_ref, g_ref, b_ref, lam_ref, o_ref, acc_ref,
                          *, inv_n, eps, activation, use_normalization, dout_p):
    k = pl.program_id(1)

    @pl.when(k == 0)
    def _():
        acc_ref[...] = jnp.zeros_like(acc_ref)

    # Single fused MXU matmul per (batch-tile, K-tile): operands stay in their
    # native dtype (bf16 -> native bf16 MXU pass), accumulate in f32.
    acc_ref[...] += jnp.dot(x_ref[...], wp_ref[...],
                            preferred_element_type=jnp.float32)

    @pl.when(k == pl.num_programs(1) - 1)
    def _():
        out = acc_ref[...]                                        # [bt, 2*Dout_p] f32

        if use_normalization:
            # LayerNorm over the REAL feature count (padded cols are zero so
            # they contribute nothing to the sums).  var = E[x^2] - E[x]^2
            # saves one full f32 elementwise pass vs. the centered form.
            s = jnp.sum(out, axis=-1, keepdims=True)
            sq = jnp.sum(out * out, axis=-1, keepdims=True)
            mean = s * inv_n
            var = jnp.maximum(sq * inv_n - mean * mean, 0.0)
            out = (out - mean) * jax.lax.rsqrt(var + eps)
            out = out * g_ref[...] + b_ref[...]                   # gamma/beta are f32

        # Activation (static branch; default identity like the torch module).
        if activation == 'relu':
            out = jnp.maximum(out, 0.0)
        elif activation == 'leaky_relu':
            out = jnp.where(out >= 0, out, 0.01 * out)
        elif activation == 'tanh':
            out = jnp.tanh(out)
        elif activation == 'sigmoid':
            out = jax.nn.sigmoid(out)
        elif activation == 'silu':
            out = out * jax.nn.sigmoid(out)
        elif activation == 'gelu':
            out = jax.nn.gelu(out, approximate=False)   # torch F.gelu default = exact erf

        # chunk + (out1 - clamp(lam2) * out2): halves are 128-lane aligned, so
        # this is a lane-aligned slice + one VPU FMA (no MXU pass, no O(D^2)
        # combine operand in VMEM).
        lam2 = lam_ref[0, 0]
        o_ref[...] = (out[:, :dout_p] - lam2 * out[:, dout_p:]).astype(o_ref.dtype)


def gaussian_rama_forward(x, w, projection, gamma, beta, lambda2, lambda_value,
                          *, use_sqrt_dim=False, use_normalization=True,
                          activation='relu', batch_tile=None):
    """Forward pass of GaussianRAMALayer.

    x:          [B, Din]
    w:          nn.Linear weight, [2*Din, Din]   (module computes x @ w.T)
    projection: [2*Din, 2*Dout]   fixed random gaussian projection
    gamma/beta: [1, 2*Dout]       LayerNorm affine params
    lambda2:    scalar (clamped to [0.2, 0.8] inside, like the module)
    lambda_value: scalar scale (module uses self.lambda_value)
    """
    B, Din = x.shape
    assert w.shape == (2 * Din, Din)
    assert projection.shape[0] == 2 * Din
    Dout2 = projection.shape[1]
    Dout = Dout2 // 2
    assert Dout2 == 2 * Dout

    sqrt_d = math.sqrt(Din) if use_sqrt_dim else 1.0

    # Fuse linear + random projection + scalar scale into ONE weight.
    # Built in f32 (closer parity with the two-matmul torch order), cast once
    # to the compute dtype.                           wp: [Din, 2*Dout]
    wp = (w.astype(jnp.float32).T @ projection.astype(jnp.float32))
    wp = (wp * jnp.float32(sqrt_d * lambda_value)).astype(x.dtype)

    # ---- pad to lane-dense / MXU-friendly shapes ---------------------------
    Dout_p = _round_up(max(Dout, 1), 128)      # each half lane-dense
    Dout2_p = 2 * Dout_p
    if Din <= 1024:
        tk, Din_p = Din, Din                   # single K step (full-dim block)
    else:
        tk = 512
        Din_p = _round_up(Din, tk)             # K-tiled weight (v7x VMEM safe)

    # Re-pack the fused weight so each half is padded independently:
    #   [ half1 (Dout) | 0.. | half2 (Dout) | 0.. ]  -> halves align to 128.
    wp_p = jnp.zeros((Din_p, Dout2_p), dtype=wp.dtype)
    wp_p = wp_p.at[:Din, :Dout].set(wp[:, :Dout])
    wp_p = wp_p.at[:Din, Dout_p:Dout_p + Dout].set(wp[:, Dout:])

    g = jnp.asarray(gamma, jnp.float32).reshape(1, Dout2)
    b = jnp.asarray(beta, jnp.float32).reshape(1, Dout2)
    g_p = jnp.zeros((1, Dout2_p), jnp.float32)
    g_p = g_p.at[:, :Dout].set(g[:, :Dout]).at[:, Dout_p:Dout_p + Dout].set(g[:, Dout:])
    b_p = jnp.zeros((1, Dout2_p), jnp.float32)
    b_p = b_p.at[:, :Dout].set(b[:, :Dout]).at[:, Dout_p:Dout_p + Dout].set(b[:, Dout:])

    x_p = x if Din_p == Din else jnp.pad(x, ((0, 0), (0, Din_p - Din)))

    lam2 = jnp.clip(jnp.asarray(lambda2, jnp.float32), 0.2, 0.8).reshape(1, 1)

    # ---- generation-aware tiling / VMEM budget -----------------------------
    vmem_cap = _vmem_capacity_bytes()
    bt = batch_tile if batch_tile is not None else _pick_batch_tile(B, Dout2_p, vmem_cap)
    assert B % bt == 0, f"batch {B} must be divisible by batch_tile {bt}"
    n_b, n_k = B // bt, Din_p // tk

    x_itm = jnp.dtype(x.dtype).itemsize
    w_itm = jnp.dtype(wp_p.dtype).itemsize
    est = (2 * bt * tk * x_itm             # x tiles (double-buffered)
           + 2 * tk * Dout2_p * w_itm      # weight tiles (double-buffered)
           + 2 * bt * Dout_p * x_itm       # output tiles
           + 2 * 2 * Dout2_p * 4           # gamma / beta
           + bt * Dout2_p * 4              # f32 accumulator scratch
           + 3 * bt * Dout2_p * 4)         # epilogue f32 intermediates headroom
    cap = max(32 * 1024 * 1024, int(vmem_cap * 0.80))   # ~51 MiB v7x, ~102 MiB v5e/v6e
    vmem_limit = int(min(max(2 * est, 32 * 1024 * 1024), cap))

    transc = B                                             # rsqrt per row
    if activation in ('tanh', 'sigmoid', 'silu', 'gelu'):
        transc += B * Dout2_p
    cost = pl.CostEstimate(
        flops=int(2 * B * Din_p * Dout2_p + 10 * B * Dout2_p),
        transcendentals=int(transc),
        bytes_accessed=int(x_p.size * x_itm + n_b * wp_p.size * w_itm
                           + (g_p.size + b_p.size + 1) * 4 + B * Dout_p * x_itm),
    )

    kernel = functools.partial(
        _gaussian_rama_kernel,
        inv_n=1.0 / float(Dout2),          # divide by the REAL feature count
        eps=1e-5,
        activation=activation,
        use_normalization=use_normalization,
        dout_p=Dout_p,
    )

    out_p = pl.pallas_call(
        kernel,
        out_shape=jax.ShapeDtypeStruct((B, Dout_p), x.dtype),
        grid=(n_b, n_k),
        in_specs=[
            pl.BlockSpec((bt, tk), lambda i, k: (i, k)),        # x (batch x K tiles)
            pl.BlockSpec((tk, Dout2_p), lambda i, k: (k, 0)),   # fused weight (K tiles)
            pl.BlockSpec((1, Dout2_p), lambda i, k: (0, 0)),    # LayerNorm gamma
            pl.BlockSpec((1, Dout2_p), lambda i, k: (0, 0)),    # LayerNorm beta
            pl.BlockSpec(memory_space=pltpu.MemorySpace.SMEM),  # clamp(lambda2) scalar
        ],
        out_specs=pl.BlockSpec((bt, Dout_p), lambda i, k: (i, 0)),
        scratch_shapes=[pltpu.VMEM((bt, Dout2_p), jnp.float32)],
        compiler_params=pltpu.CompilerParams(
            dimension_semantics=("parallel", "arbitrary"),
            vmem_limit_bytes=vmem_limit),
        cost_estimate=cost,
    )(x_p, wp_p, g_p, b_p, lam2)

    # Un-pad the output (lane-dense inside the kernel, exact width outside).
    return out_p[:, :Dout] if Dout_p != Dout else out_p


def _reference(x, w, projection, gamma, beta, lambda2, lambda_value,
               use_sqrt_dim=False):
    """Pure-JAX f32 reference mirroring the PyTorch module (relu activation)."""
    sqrt_d = math.sqrt(x.shape[-1]) if use_sqrt_dim else 1.0
    out = x @ w.T
    out = out @ projection
    out = out * (sqrt_d * lambda_value)
    mean = jnp.mean(out, axis=-1, keepdims=True)
    var = jnp.mean(jnp.square(out - mean), axis=-1, keepdims=True)
    out = (out - mean) * jax.lax.rsqrt(var + 1e-5)
    out = out * gamma + beta
    out = jnp.maximum(out, 0.0)
    d = out.shape[-1] // 2
    lam2 = jnp.clip(lambda2, 0.2, 0.8)
    return out[:, :d] - lam2 * out[:, d:]


if __name__ == "__main__":
    key = jax.random.PRNGKey(0)
    k_x, k_w, k_p = jax.random.split(key, 3)

    # Small shapes consistent with the module: batch=8, input_dim=32, output_dim=16.
    batch, input_dim, output_dim = 8, 32, 16

    x = jax.random.normal(k_x, (batch, input_dim), dtype=jnp.float32)

    # nn.Linear(input_dim, 2*input_dim, bias=False): weight [2*Din, Din]
    w = jax.random.normal(k_w, (2 * input_dim, input_dim), dtype=jnp.float32) \
        * (1.0 / math.sqrt(input_dim))

    # projection ~ randn(2*input_dim, 2*output_dim), non-trainable
    projection = jax.random.normal(k_p, (2 * input_dim, 2 * output_dim),
                                   dtype=jnp.float32)

    # LayerNorm(2*output_dim) default affine params
    gamma = jnp.ones((1, 2 * output_dim), dtype=jnp.float32)
    beta = jnp.zeros((1, 2 * output_dim), dtype=jnp.float32)

    lambda2 = 0.5        # nn.Parameter(torch.tensor(0.5))
    lambda_value = 1.0   # self.lambda_value

    # f32 path (tight check vs reference).
    out = gaussian_rama_forward(x, w, projection, gamma, beta,
                                lambda2, lambda_value)
    out = jax.block_until_ready(out)
    ref = _reference(x, w, projection, gamma, beta, lambda2, lambda_value)
    assert out.shape == (batch, output_dim)
    assert jnp.allclose(out, ref, atol=5e-4, rtol=5e-4), \
        f"max abs err {float(jnp.max(jnp.abs(out - ref)))}"

    # bf16 fast path (native MXU dtype; operands are NOT upcast in-kernel).
    out_bf16 = gaussian_rama_forward(x.astype(jnp.bfloat16),
                                     w.astype(jnp.bfloat16),
                                     projection.astype(jnp.bfloat16),
                                     gamma, beta, lambda2, lambda_value)
    out_bf16 = jax.block_until_ready(out_bf16)
    assert out_bf16.shape == (batch, output_dim)
    assert jnp.allclose(out_bf16.astype(jnp.float32), ref, atol=2e-1, rtol=2e-1)

    print("KERNEL_OK")
</pallas_src>

<mosaic_0001>
module attributes {stable_mosaic.version = 11 : i64} {
  func.func @_gaussian_rama_kernel(%arg0: i32, %arg1: i32, %arg2: memref<8x32xf32, #tpu.memory_space<vmem>>, %arg3: memref<32x256xf32, #tpu.memory_space<vmem>>, %arg4: memref<1x256xf32, #tpu.memory_space<vmem>>, %arg5: memref<1x256xf32, #tpu.memory_space<vmem>>, %arg6: memref<1x1xf32, #tpu.memory_space<smem>>, %arg7: memref<8x128xf32, #tpu.memory_space<vmem>>, %arg8: memref<8x256xf32, #tpu.memory_space<vmem>>) attributes {dimension_semantics = [#tpu.dimension_semantics<parallel>, #tpu.dimension_semantics<arbitrary>], iteration_bounds = array<i64: 1, 1>, scalar_prefetch = 0 : i64, scratch_operands = 1 : i64, tpu.core_type = #tpu.core_type<tc>, window_params = [{transform_indices = @transform_0, window_bounds = array<i64: 8, 32>}, {transform_indices = @transform_1, window_bounds = array<i64: 32, 256>}, {pipeline_mode = #tpu.pipeline_mode<synchronous>, transform_indices = @transform_2, window_bounds = array<i64: 1, 256>}, {pipeline_mode = #tpu.pipeline_mode<synchronous>, transform_indices = @transform_3, window_bounds = array<i64: 1, 256>}, {transform_indices = @transform_4, window_bounds = array<i64: 1, 1>}, {transform_indices = @transform_5, window_bounds = array<i64: 8, 128>}]} {
    %c0_i32 = arith.constant 0 : i32
    %0 = arith.cmpi eq, %arg1, %c0_i32 : i32
    %1 = arith.extui %0 : i1 to i32
    %c0_i32_0 = arith.constant 0 : i32
    %2 = arith.cmpi ne, %1, %c0_i32_0 : i32
    scf.if %2 {
      %cst_10 = arith.constant 0.000000e+00 : f32
      %12 = vector.broadcast %cst_10 : f32 to vector<8x256xf32>
      %c0_11 = arith.constant 0 : index
      %c0_12 = arith.constant 0 : index
      %13 = vector.load %arg8[%c0_11, %c0_12] : memref<8x256xf32, #tpu.memory_space<vmem>>, vector<8x256xf32>
      tpu.vector_store %arg8[%c0_11, %c0_12], %12 {strides = array<i32>} : memref<8x256xf32, #tpu.memory_space<vmem>>, vector<8x256xf32>,
    } else {
    }
    %c0 = arith.constant 0 : index
    %c0_1 = arith.constant 0 : index
    %3 = vector.load %arg8[%c0, %c0_1] : memref<8x256xf32, #tpu.memory_space<vmem>>, vector<8x256xf32>
    %c0_2 = arith.constant 0 : index
    %c0_3 = arith.constant 0 : index
    %4 = vector.load %arg2[%c0_2, %c0_3] : memref<8x32xf32, #tpu.memory_space<vmem>>, vector<8x32xf32>
    %c0_4 = arith.constant 0 : index
    %c0_5 = arith.constant 0 : index
    %5 = vector.load %arg3[%c0_4, %c0_5] : memref<32x256xf32, #tpu.memory_space<vmem>>, vector<32x256xf32>
    %cst = arith.constant dense<0.000000e+00> : vector<8x256xf32>
    %6 = tpu.matmul %4, %5, %cst {dimension_numbers = #tpu.dot_dimension_numbers<[1], [0], [0], [1], [0, 0, 1, 1], [], []>} : vector<8x32xf32>, vector<32x256xf32>, vector<8x256xf32> -> vector<8x256xf32>
    %7 = arith.addf %3, %6 : vector<8x256xf32>
    %c0_6 = arith.constant 0 : index
    %c0_7 = arith.constant 0 : index
    %8 = vector.load %arg8[%c0_6, %c0_7] : memref<8x256xf32, #tpu.memory_space<vmem>>, vector<8x256xf32>
    tpu.vector_store %arg8[%c0_6, %c0_7], %7 {strides = array<i32>} : memref<8x256xf32, #tpu.memory_space<vmem>>, vector<8x256xf32>,
    %c0_i32_8 = arith.constant 0 : i32
    %9 = arith.cmpi eq, %arg1, %c0_i32_8 : i32
    %10 = arith.extui %9 : i1 to i32
    %c0_i32_9 = arith.constant 0 : i32
    %11 = arith.cmpi ne, %10, %c0_i32_9 : i32
    scf.if %11 {
      %c0_10 = arith.constant 0 : index
      %c0_11 = arith.constant 0 : index
      %12 = vector.load %arg8[%c0_10, %c0_11] : memref<8x256xf32, #tpu.memory_space<vmem>>, vector<8x256xf32>
      %cst_12 = arith.constant dense<0.000000e+00> : vector<8xf32>
      %13 = vector.multi_reduction <add>, %12, %cst_12 [1] : vector<8x256xf32> to vector<8xf32>
      %14 = vector.shape_cast %13 : vector<8xf32> to vector<8x1xf32>
      %15 = arith.mulf %12, %12 : vector<8x256xf32>
      %cst_13 = arith.constant dense<0.000000e+00> : vector<8xf32>
      %16 = vector.multi_reduction <add>, %15, %cst_13 [1] : vector<8x256xf32> to vector<8xf32>
      %17 = vector.shape_cast %16 : vector<8xf32> to vector<8x1xf32>
      %cst_14 = arith.constant 3.125000e-02 : f32
      %18 = vector.broadcast %cst_14 : f32 to vector<8x1xf32>
      %19 = arith.mulf %14, %18 : vector<8x1xf32>
      %cst_15 = arith.constant 3.125000e-02 : f32
      %20 = vector.broadcast %cst_15 : f32 to vector<8x1xf32>
      %21 = arith.mulf %17, %20 : vector<8x1xf32>
      %22 = arith.mulf %19, %19 : vector<8x1xf32>
      %23 = arith.subf %21, %22 : vector<8x1xf32>
      %cst_16 = arith.constant 0.000000e+00 : f32
      %24 = vector.broadcast %cst_16 : f32 to vector<8x1xf32>
      %25 = arith.maximumf %23, %24 : vector<8x1xf32>
      %26 = vector.broadcast %19 : vector<8x1xf32> to vector<8x256xf32>
      %27 = arith.subf %12, %26 : vector<8x256xf32>
      %cst_17 = arith.constant 9.99999974E-6 : f32
      %28 = vector.broadcast %cst_17 : f32 to vector<8x1xf32>
      %29 = arith.addf %25, %28 : vector<8x1xf32>
      %30 = math.rsqrt %29 : vector<8x1xf32>
      %31 = vector.broadcast %30 : vector<8x1xf32> to vector<8x256xf32>
      %32 = arith.mulf %27, %31 : vector<8x256xf32>
      %c0_18 = arith.constant 0 : index
      %c0_19 = arith.constant 0 : index
      %33 = vector.load %arg4[%c0_18, %c0_19] : memref<1x256xf32, #tpu.memory_space<vmem>>, vector<1x256xf32>
      %34 = vector.broadcast %33 : vector<1x256xf32> to vector<8x256xf32>
      %35 = arith.mulf %32, %34 : vector<8x256xf32>
      %c0_20 = arith.constant 0 : index
      %c0_21 = arith.constant 0 : index
      %36 = vector.load %arg5[%c0_20, %c0_21] : memref<1x256xf32, #tpu.memory_space<vmem>>, vector<1x256xf32>
      %37 = vector.broadcast %36 : vector<1x256xf32> to vector<8x256xf32>
      %38 = arith.addf %35, %37 : vector<8x256xf32>
      %cst_22 = arith.constant 0.000000e+00 : f32
      %39 = vector.broadcast %cst_22 : f32 to vector<8x256xf32>
      %40 = arith.maximumf %38, %39 : vector<8x256xf32>
      %c0_23 = arith.constant 0 : index
      %c0_24 = arith.constant 0 : index
      %41 = memref.load %arg6[%c0_23, %c0_24] : memref<1x1xf32, #tpu.memory_space<smem>>
      %42 = vector.extract_strided_slice %40 {offsets = [0, 0], sizes = [8, 128], strides = [1, 1]} : vector<8x256xf32> to vector<8x128xf32>
      %43 = vector.extract_strided_slice %40 {offsets = [0, 128], sizes = [8, 128], strides = [1, 1]} : vector<8x256xf32> to vector<8x128xf32>
      %44 = vector.broadcast %41 : f32 to vector<8x128xf32>
      %45 = arith.mulf %44, %43 : vector<8x128xf32>
      %46 = arith.subf %42, %45 : vector<8x128xf32>
      %c0_25 = arith.constant 0 : index
      %c0_26 = arith.constant 0 : index
      %47 = vector.load %arg7[%c0_25, %c0_26] : memref<8x128xf32, #tpu.memory_space<vmem>>, vector<8x128xf32>
      tpu.vector_store %arg7[%c0_25, %c0_26], %46 {strides = array<i32>} : memref<8x128xf32, #tpu.memory_space<vmem>>, vector<8x128xf32>,
    } else {
    }
    return
  }
  func.func @transform_0(%arg0: i32, %arg1: i32) -> (i32, i32) {
    %c0_i32 = arith.constant 0 : i32
    return %arg0, %arg1 : i32, i32
  }
  func.func @transform_1(%arg0: i32, %arg1: i32) -> (i32, i32) {
    %c0_i32 = arith.constant 0 : i32
    %c0_i32_0 = arith.constant 0 : i32
    return %arg1, %c0_i32 : i32, i32
  }
  func.func @transform_2(%arg0: i32, %arg1: i32) -> (i32, i32) {
    %c0_i32 = arith.constant 0 : i32
    %c0_i32_0 = arith.constant 0 : i32
    %c0_i32_1 = arith.constant 0 : i32
    return %c0_i32, %c0_i32_0 : i32, i32
  }
  func.func @transform_3(%arg0: i32, %arg1: i32) -> (i32, i32) {
    %c0_i32 = arith.constant 0 : i32
    %c0_i32_0 = arith.constant 0 : i32
    %c0_i32_1 = arith.constant 0 : i32
    return %c0_i32, %c0_i32_0 : i32, i32
  }
  func.func @transform_4(%arg0: i32, %arg1: i32) -> (i32, i32) {
    %c0_i32 = arith.constant 0 : i32
    %c0_i32_0 = arith.constant 0 : i32
    %c0_i32_1 = arith.constant 0 : i32
    return %c0_i32, %c0_i32_0 : i32, i32
  }
  func.func @transform_5(%arg0: i32, %arg1: i32) -> (i32, i32) {
    %c0_i32 = arith.constant 0 : i32
    %c0_i32_0 = arith.constant 0 : i32
    return %arg0, %c0_i32 : i32, i32
  }
}

</mosaic_0001>

<bundles_post_ra>
// kernel: tpu_custom_call.1
= control target key start
LH: loop header
LB: loop body
LE: loop exit
PB: predicated region body
PF: predicated region fallthrough
CT: control target
= control target key end

     0   :  { %11 = vsyncpa [#allocation5], 0  ;;  %s348_s0 = inlined_call_operand.hbm [shape: f32[8,32], index: 0, kind: input, shape index: {}]   ;;  %s349_s1 = inlined_call_operand.hbm [shape: f32[32,256], index: 1, kind: input, shape index: {}]   ;;  %s350_s2 = inlined_call_operand.vmem [shape: f32[1,256], index: 2, kind: input, shape index: {}]   ;;  %s351_s3 = inlined_call_operand.vmem [shape: f32[1,256], index: 3, kind: input, shape index: {}]   ;;  %s352_s4 = inlined_call_operand.<no memory space> [shape: f32[1,1], index: 4, kind: input, shape index: {}]   ;;  %s353_s5 = inlined_call_operand.hbm [shape: f32[8,128], index: 5, kind: output, shape index: {}]  }
   0x1   :  { %12 = vsyncpa [#allocation8], 0 }
   0x2   :  { %13 = vsyncpa [#allocation6], 0  ;;  %s294_s18 = smov [#allocation4]   ;;  %s295_s20 = smov [#allocation7]  }
   0x3   :  { %s20_s19 = sshll.u32 %s294_s18, 4  ;;  %s29_s21 = sshll.u32 %s295_s20, 4  ;;  %s21_s19 = int_to_ptr.vmem [resolvable:$true] %s20_s19  ;;  %s30_s21 = int_to_ptr.vmem [resolvable:$true] %s29_s21 }
   0x4   :  { %s236_s22 = scalar_lea.vmem %s21_s19, 128  ;;  %p241_p1 = scmp.lt.s32.totalorder %s21_s19, %s21_s19 }
   0x5   :  { %p237_p0 = scmp.ne.s32.totalorder %s21_s19, %s236_s22  ;;  %p242_p2 = scmp.lt.s32.totalorder %s236_s22, %s236_s22 }
   0x7   :  { %p243_p3 = por %p242_p2, %p241_p1 }
   0x9   :  { %p244_p4 = pnand %p243_p3, %p237_p0 }
   0xb   :  { %247 = shalt.err (!%p244_p4)
}
   0xc   :  { %23 = dma.hbm_to_vmem [thread:$0]  %s348_s0, 128, %s21_s19, [#allocation5]  }
   0xd   :  { %s256_s25 = scalar_lea.vmem %s30_s21, 1024  ;;  %p261_p6 = scmp.lt.s32.totalorder %s30_s21, %s30_s21 }
   0xe   :  { %p257_p5 = scmp.ne.s32.totalorder %s30_s21, %s256_s25  ;;  %p262_p7 = scmp.lt.s32.totalorder %s256_s25, %s256_s25 }
  0x10   :  { %p263_p8 = por %p262_p7, %p261_p6 }
  0x12   :  { %p264_p9 = pnand %p263_p8, %p257_p5 }
  0x14   :  { %267 = shalt.err (!%p264_p9)
}
  0x15   :  { %s296_s26 = smov 256   ;;  %s297_s27 = smov 16  }
  0x16   :  { %35 = dma.hbm_to_vmem [thread:$0]  %s349_s1, 1024, %s30_s21, [#allocation8], %s296_s26, %s296_s26, %s297_s27  }
  0x17   :  { %288 = dma.done.wait [#allocation5], 128  }
  0x18   :  { %289 = vsyncadd [#allocation5], 4294967168 }
  0x19   :  { %290 = dma.done.wait [#allocation8], 1024  }
  0x1a   :  { %291 = vsyncadd [#allocation8], 4294966272  ;;  %v298_v0 = vmov 0.0   ;;  %v64_v1 = vld [vmem:[#allocation7 + $0x38] sm:$0xff]  ;;  %v63_v2 = vld [vmem:[#allocation7 + $0x30] sm:$0xff]  ;;  %vm65_vm0 = vcmask 261120   ;;  %v170_v24 = vlaneseq  ;;  %v199_v43 = vstv %s352_s4 }
  0x1b   :  { %133 = vmatprep.mubr.f32.mxu0 %v298_v0  ;;  %v62_v3 = vld [vmem:[#allocation7 + $0x28] sm:$0xff]  ;;  %93 = vmatprep.subr.mxu0 %v64_v1  ;;  %v61_v4 = vld [vmem:[#allocation7 + $0x20] sm:$0xff]  ;;  %v60_v5 = vld [vmem:[#allocation7 + $0x18] sm:$0xff] }
  0x1c   :  { %94 = vmatpush1.msra.mxu0 %v63_v2  ;;  %v59_v6 = vld [vmem:[#allocation7 + $0x10] sm:$0xff]  ;;  %v58_v7 = vld [vmem:[#allocation7 + $0x8] sm:$0xff]  ;;  %v57_v8 = vld [vmem:[#allocation7] sm:$0xff]  ;;  %v171_v25 = vshrl.u32 %v170_v24, 7 }
  0x1d   :  { %95 = vmatprep.subr.mxu0 %v62_v3  ;;  %v56_v9 = vld [vmem:[#allocation4] sm:$0xff] }
  0x1e   :  { %96 = vmatpush1.msra.mxu0 %v61_v4  ;;  %v172_v26 = vsub.s32 0, %v171_v25  ;;  %v176_v27 = vsub.s32 1, %v171_v25  ;;  %v168_v28 = vld [vmem:[%s350_s2] sm:$0x3]  ;;  %s299_s2 = smov [#allocation9]  }
  0x1f   :  { %97 = vmatprep.subr.mxu0 %v60_v5  ;;  %v182_v29 = vld [vmem:[%s351_s3] sm:$0x3]  ;;  %s209_s3 = sshll.u32 %s299_s2, 4  ;;  %s210_s3 = int_to_ptr.vmem [resolvable:$true] %s209_s3 }
  0x20   :  { %98 = vmatpush1.msra.mxu0 %v59_v6  ;;  %v173_v32 = vrot.slane %v168_v28, %v172_v26  ;;  %v177_v33 = vrot.slane %v168_v28, %v176_v27  ;;  %v187_v37 = vrot.slane %v182_v29, %v172_v26  ;;  %v191_v38 = vrot.slane %v182_v29, %v176_v27  ;;  %s268_s9 = scalar_lea.vmem %s210_s3, 128  ;;  %p273_p11 = scmp.lt.s32.totalorder %s210_s3, %s210_s3 }
  0x21   :  { %99 = vmatprep.subr.mxu0 %v58_v7  ;;  %p269_p10 = scmp.ne.s32.totalorder %s210_s3, %s268_s9  ;;  %p274_p12 = scmp.lt.s32.totalorder %s268_s9, %s268_s9 }
  0x22   :  { %100 = vmatpush1.msra.mxu0 %v57_v8 }
  0x23   :  { %219 = vmatmul.mubr.msk.f32.vlgmr.msra.gmra.mxu0 %vm65_vm0, %v56_v9  ;;  %p275_p13 = por %p274_p12, %p273_p11 }
  0x25   :  { %p276_p0 = pnand %p275_p13, %p269_p10 }
  0xe3   :  { %v135_v10 = vpop.f32.mrf.mxu0 }
  0xe4   :  { %v152_v14 = vmul.f32 %v135_v10, %v135_v10 }
  0xe5   :  { %v137_v11 = vpop.f32.mrf.mxu0 }
  0xe6   :  { %v153_v12 = vmul.f32 %v137_v11, %v137_v11  ;;  %v149_v13 = vadd.f32 %v137_v11, %v135_v10 }
  0xe8   :  { %150 = vadd.xlane.f32.xlu0 %v149_v13  ;;  %v154_v15 = vadd.f32 %v153_v12, %v152_v14 }
  0xec   :  { %155 = vadd.xlane.f32.xlu0 %v154_v15 }
 0x171   :  { %v151_v16 = vpop.xlane.xlu0 %150 }
 0x172   :  { %v157_v17 = vmul.f32 0.03125, %v151_v16 }
 0x174   :  { %v159_v19 = vmul.f32 %v157_v17, %v157_v17  ;;  %v162_v30 = vsub.f32 %v135_v10, %v157_v17  ;;  %v163_v31 = vsub.f32 %v137_v11, %v157_v17 }
 0x175   :  { %v156_v18 = vpop.xlane.xlu0 %155 }
 0x176   :  { %v158_v20 = vmul.f32 0.03125, %v156_v18 }
 0x178   :  { %v160_v21 = vsub.f32 %v158_v20, %v159_v19 }
 0x17a   :  { %v161_v22 = vmax.f32 %v160_v21, 0.0 }
 0x17c   :  { %v164_v23 = vadd.f32 1e-05, %v161_v22 }
 0x17e   :  { %226 = vrsqrt.f32 %v164_v23 }
 0x18b   :  { %v227_v34 = vpop.eup %226 }
 0x18c   :  { %v166_v35 = vmul.f32 %v227_v34, %v162_v30  ;;  %v167_v36 = vmul.f32 %v227_v34, %v163_v31 }
 0x18e   :  { %v180_v39 = vmul.f32 %v173_v32, %v166_v35  ;;  %v181_v40 = vmul.f32 %v177_v33, %v167_v36 }
 0x190   :  { %v194_v41 = vadd.f32 %v187_v37, %v180_v39  ;;  %v195_v42 = vadd.f32 %v191_v38, %v181_v40 }
 0x192   :  { %v197_v44 = vmax.f32 %v195_v42, 0.0  ;;  %v196_v45 = vmax.f32 %v194_v41, 0.0 }
 0x194   :  { %v200_v46 = vmul.f32 %v199_v43, %v197_v44 }
 0x196   :  { %v201_v47 = vsub.f32 %v196_v45, %v200_v46 }
 0x198   :  { %202 = vst [vmem:[#allocation9] sm:$0xff] %v201_v47 }
 0x199   :  { %279 = shalt.err (!%p276_p0)
}
 0x19a   :  { %212 = dma.vmem_to_hbm [thread:$0]  %s210_s3, 128, %s353_s5, [#allocation6]  }
 0x19b   :  { %292 = dma.done.wait [#allocation6], 128  }
 0x19c   :  { %293 = vsyncadd [#allocation6], 4294967168 }
 0x19d   :  { %216 = vsyncpa [#allocation5], 1 }
 0x19e   :  { %217 = vsyncpa [#allocation8], 1 }
 0x19f   :  { %218 = vsyncpa [#allocation6], 1 }

</bundles_post_ra>
